<compile_context>
chip_gen: v5e
topology: v5e:2x2
jax: 0.10.0
libtpu: 0.0.40
codegen_flags: <defaults>
</compile_context>

<pallas_src>
import functools

import jax
import jax.numpy as jnp
from jax.experimental import pallas as pl
from jax.experimental.pallas import tpu as pltpu

_MIB = 1024 * 1024


def _round_up(n, m):
    return ((n + m - 1) // m) * m


# ---------------------------------------------------------------------------
# Kernels
# ---------------------------------------------------------------------------

def _sigmoid_f32(y):
    # Clamp so exp never overflows; divide via the EUP approx-reciprocal
    # instead of a VALU divide/Newton sequence (matters most on v5e).
    z = jnp.exp(-jnp.clip(y, -80.0, 80.0))
    return pl.reciprocal(1.0 + z, approx=True)


def _fused_kernel(x_ref, w_ref, b_ref, o_ref):
    # x_ref: (TB, F) native dtype | w_ref: (F, 2*Cp) | b_ref: (1, 2*Cp) f32
    # o_ref: (TB, Cp).  Rows of a ragged last block that fall outside B are
    # computed but never stored (Pallas masks the partial write).
    cp = o_ref.shape[-1]
    x = x_ref[...].astype(w_ref.dtype)           # cast in-kernel, not in HBM
    y = jnp.dot(x, w_ref[...], preferred_element_type=jnp.float32)
    y = y + b_ref[...]
    act = _sigmoid_f32(y[:, :cp])                # split on a 128-lane boundary
    gate = _sigmoid_f32(y[:, cp:])
    o_ref[...] = (act * gate).astype(o_ref.dtype)


def _tiled_kernel(x_ref, wa_ref, wg_ref, ba_ref, bg_ref, o_ref):
    # Fallback for heads whose packed weight cannot stay resident in VMEM.
    # x_ref: (TB, F) | wa/wg: (F, TN) | ba/bg: (1, TN) f32 | o_ref: (TB, TN)
    x = x_ref[...].astype(wa_ref.dtype)
    ya = jnp.dot(x, wa_ref[...], preferred_element_type=jnp.float32) + ba_ref[...]
    yg = jnp.dot(x, wg_ref[...], preferred_element_type=jnp.float32) + bg_ref[...]
    o_ref[...] = (_sigmoid_f32(ya) * _sigmoid_f32(yg)).astype(o_ref.dtype)


# ---------------------------------------------------------------------------
# One-time parameter packing (model-load time, not per forward)
# ---------------------------------------------------------------------------

def pack_gated_head_params(weight, bias, n_cls, compute_dtype=jnp.bfloat16):
    """weight: (2*n_cls, in_feats), bias: (2*n_cls,) ->
         w_packed: (in_feats, 2*Cp) compute_dtype (act cols, then gate cols)
         b_packed: (1, 2*Cp) float32
       Cp = n_cls rounded up to a multiple of 128 (lane-dense, free split).
       Use compute_dtype=jnp.float32 if bf16 input rounding is a concern."""
    two_c, _ = weight.shape
    assert two_c == 2 * n_cls
    cp = max(_round_up(n_cls, 128), 128)
    pad = cp - n_cls
    w_act = jnp.pad(weight[:n_cls, :].T, ((0, 0), (0, pad)))
    w_gate = jnp.pad(weight[n_cls:, :].T, ((0, 0), (0, pad)))
    b_act = jnp.pad(bias[:n_cls], (0, pad))
    b_gate = jnp.pad(bias[n_cls:], (0, pad))
    w_packed = jnp.concatenate([w_act, w_gate], axis=1).astype(compute_dtype)
    b_packed = (jnp.concatenate([b_act, b_gate])
                .reshape(1, 2 * cp).astype(jnp.float32))
    return w_packed, b_packed, cp


# ---------------------------------------------------------------------------
# Generation-aware sizing
# ---------------------------------------------------------------------------

@functools.cache
def _vmem_budget_bytes():
    # ~80% of per-core VMEM: ~51 MiB on v7x (64 MiB/TC), ~102 MiB on v5e/v6e
    # (128 MiB).  Falls back to the conservative 64 MiB figure if the query
    # is unavailable.
    try:
        cap = int(pltpu.get_tpu_info().vmem_capacity_bytes)
        cap = max(cap, 32 * _MIB)
    except Exception:
        cap = 64 * _MIB
    return (cap * 4) // 5


def _plan_fused_tb(batch, f, cp, x_item, w_item, out_item, budget):
    """Batch tile for the fused (resident-weight) path, or None if the packed
    weight cannot stay resident within the VMEM budget."""
    align = 16 if x_item == 2 else 8            # sublane packing of x's dtype
    # Conservative: assume weight/bias still double-buffered (true if
    # pl.Buffered(1) is unavailable on this Pallas build).
    resident = 2 * f * (2 * cp) * w_item + 2 * (2 * cp) * 4
    per_row = (2 * f * x_item                   # double-buffered x tile
               + 2 * cp * out_item              # double-buffered out tile
               + f * w_item                     # in-kernel cast of x
               + 2 * cp * 4                     # f32 y
               + 3 * cp * 4)                    # f32 act, gate, product
    avail = budget - resident
    if avail < per_row * align:
        return None
    small_f = f * x_item <= 8 * 1024
    tb_cap = 512 if budget <= 56 * _MIB else (2048 if small_f else 1024)
    tb = min(tb_cap, avail // per_row)
    tb = max(align, (tb // align) * align)
    if tb >= batch:
        tb = batch                              # single full-extent block
        if budget <= 56 * _MIB and batch >= 2 * align:
            # 2-TensorCore parts: give the "parallel" batch axis >= 2 steps.
            tb = _round_up(pl.cdiv(batch, 2), align)
    return tb


def _plan_tiled(batch, f, cp, x_item, w_item, out_item, budget):
    """(TB, TN) for the Cp-tiled fallback path."""
    align = 16 if x_item == 2 else 8

    def est(tb, tn):
        w_stream = 2 * (2 * f * tn * w_item) + 2 * (2 * tn * 4)  # act+gate W, bias
        per_row = (2 * f * x_item + f * w_item   # x tiles + in-kernel cast
                   + 2 * tn * out_item            # out tiles
                   + 2 * tn * 4                   # f32 ya + yg
                   + 3 * tn * 4)                  # f32 act, gate, product
        return w_stream + per_row * tb

    m = cp // 128
    tn = 128
    for d in range(1, m + 1):                    # largest 128-multiple divisor of Cp
        if m % d == 0 and est(align, 128 * d) <= budget:
            tn = 128 * d
    tb_cap = 512 if budget <= 56 * _MIB else 1024
    tb = align
    while tb * 2 <= tb_cap and est(tb * 2, tn) <= budget:
        tb *= 2
    if tb >= batch:
        tb = batch
        if budget <= 56 * _MIB and batch >= 2 * align and tn == cp:
            tb = _round_up(pl.cdiv(batch, 2), align)
    return tb, tn


# ---------------------------------------------------------------------------
# Forward pass
# ---------------------------------------------------------------------------

def _resident_spec(block_shape, index_map, single_buffer):
    if single_buffer:
        return pl.BlockSpec(block_shape, index_map, pipeline_mode=pl.Buffered(1))
    return pl.BlockSpec(block_shape, index_map)


@functools.partial(jax.jit, static_argnames=("n_cls", "single_buffer"))
def _gated_head_impl(x, w_packed, b_packed, n_cls, single_buffer):
    b, f = x.shape
    cp = b_packed.shape[-1] // 2
    out_dtype = x.dtype
    x_item = jnp.dtype(x.dtype).itemsize
    w_item = jnp.dtype(w_packed.dtype).itemsize
    out_item = jnp.dtype(out_dtype).itemsize
    budget = _vmem_budget_bytes()

    cost = pl.CostEstimate(
        flops=2 * b * f * (2 * cp),
        transcendentals=2 * b * cp,
        bytes_accessed=(b * f * x_item + f * 2 * cp * w_item + 2 * cp * 4
                        + b * cp * out_item),
    )

    tb = _plan_fused_tb(b, f, cp, x_item, w_item, out_item, budget)
    if tb is not None:
        # Common case: whole packed weight stays VMEM-resident; one fused dot.
        out = pl.pallas_call(
            _fused_kernel,
            out_shape=jax.ShapeDtypeStruct((b, cp), out_dtype),
            grid_spec=pltpu.PrefetchScalarGridSpec(
                num_scalar_prefetch=0,
                grid=(pl.cdiv(b, tb),),
                in_specs=[
                    pl.BlockSpec((tb, f), lambda i: (i, 0)),   # streamed x tiles
                    _resident_spec((f, 2 * cp), lambda i: (0, 0), single_buffer),
                    _resident_spec((1, 2 * cp), lambda i: (0, 0), single_buffer),
                ],
                out_specs=pl.BlockSpec((tb, cp), lambda i: (i, 0)),
            ),
            compiler_params=pltpu.CompilerParams(
                dimension_semantics=("parallel",),
                vmem_limit_bytes=budget,
            ),
            cost_estimate=cost,
        )(x, w_packed, b_packed)
    else:
        # Large-head fallback: tile the class dimension.  The packed weight /
        # bias are passed twice (act slab / gate slab) with offset column
        # index maps; both dots share the same streamed x tile.
        tb, tn = _plan_tiled(b, f, cp, x_item, w_item, out_item, budget)
        n_j = cp // tn
        out = pl.pallas_call(
            _tiled_kernel,
            out_shape=jax.ShapeDtypeStruct((b, cp), out_dtype),
            grid_spec=pltpu.PrefetchScalarGridSpec(
                num_scalar_prefetch=0,
                grid=(pl.cdiv(b, tb), n_j),
                in_specs=[
                    pl.BlockSpec((tb, f), lambda i, j: (i, 0)),
                    pl.BlockSpec((f, tn), lambda i, j: (0, j)),          # act W
                    pl.BlockSpec((f, tn), lambda i, j: (0, n_j + j)),    # gate W
                    pl.BlockSpec((1, tn), lambda i, j: (0, j)),          # act b
                    pl.BlockSpec((1, tn), lambda i, j: (0, n_j + j)),    # gate b
                ],
                out_specs=pl.BlockSpec((tb, tn), lambda i, j: (i, j)),
            ),
            compiler_params=pltpu.CompilerParams(
                dimension_semantics=("parallel", "parallel"),
                vmem_limit_bytes=budget,
            ),
            cost_estimate=cost,
        )(x, w_packed, w_packed, b_packed, b_packed)

    return out[:, :n_cls]


_SINGLE_BUFFER_OK = True   # flips to False if pl.Buffered(1) is rejected


def gated_head(x, w_packed, b_packed, n_cls):
    """GatedHead forward: x (B, in_feats) -> (B, n_cls)."""
    global _SINGLE_BUFFER_OK
    if _SINGLE_BUFFER_OK:
        try:
            return _gated_head_impl(x, w_packed, b_packed,
                                    n_cls=n_cls, single_buffer=True)
        except Exception:
            # This Pallas build rejected single-buffered resident specs;
            # fall back to default double-buffering (budget already assumes it).
            _SINGLE_BUFFER_OK = False
    return _gated_head_impl(x, w_packed, b_packed,
                            n_cls=n_cls, single_buffer=False)


if __name__ == "__main__":
    # Small shapes consistent with the module: batch=8, in_feats=32, n_cls=16.
    B, IN_FEATS, N_CLS = 8, 32, 16

    key = jax.random.PRNGKey(0)
    kx, kw, kb = jax.random.split(key, 3)

    x = jax.random.normal(kx, (B, IN_FEATS), dtype=jnp.float32)
    # PyTorch nn.Linear layout: weight (2*n_cls, in_feats), bias (2*n_cls,).
    bound = 1.0 / (IN_FEATS ** 0.5)
    weight = jax.random.uniform(kw, (2 * N_CLS, IN_FEATS),
                                minval=-bound, maxval=bound, dtype=jnp.float32)
    bias = jax.random.uniform(kb, (2 * N_CLS,),
                              minval=-bound, maxval=bound, dtype=jnp.float32)

    # One-time packing (would happen at model-load time, not per forward).
    w_packed, b_packed, _ = pack_gated_head_params(weight, bias, N_CLS)

    out = gated_head(x, w_packed, b_packed, N_CLS)
    out = jax.block_until_ready(out)

    # Pure-JAX f32 reference (kernel matmul operands are bf16 -> relaxed tol).
    y_ref = x @ weight.T + bias
    ref = jax.nn.sigmoid(y_ref[:, :N_CLS]) * jax.nn.sigmoid(y_ref[:, N_CLS:])
    assert out.shape == (B, N_CLS)
    err = float(jnp.max(jnp.abs(out - ref)))
    assert jnp.allclose(out, ref, atol=2e-2, rtol=2e-2), err

    print("KERNEL_OK")
</pallas_src>

<mosaic_0001>
module attributes {stable_mosaic.version = 11 : i64} {
  func.func @_fused_kernel(%arg0: i32, %arg1: memref<8x32xf32, #tpu.memory_space<vmem>>, %arg2: memref<32x256xbf16, #tpu.memory_space<vmem>>, %arg3: memref<1x256xf32, #tpu.memory_space<vmem>>, %arg4: memref<8x128xf32, #tpu.memory_space<vmem>>) attributes {dimension_semantics = [#tpu.dimension_semantics<parallel>], iteration_bounds = array<i64: 1>, scalar_prefetch = 0 : i64, scratch_operands = 0 : i64, tpu.core_type = #tpu.core_type<tc>, window_params = [{transform_indices = @transform_0, window_bounds = array<i64: 8, 32>}, {pipeline_mode = #tpu.pipeline_mode<synchronous>, transform_indices = @transform_1, window_bounds = array<i64: 32, 256>}, {pipeline_mode = #tpu.pipeline_mode<synchronous>, transform_indices = @transform_2, window_bounds = array<i64: 1, 256>}, {transform_indices = @transform_3, window_bounds = array<i64: 8, 128>}]} {
    %c0 = arith.constant 0 : index
    %c0_0 = arith.constant 0 : index
    %0 = vector.load %arg1[%c0, %c0_0] : memref<8x32xf32, #tpu.memory_space<vmem>>, vector<8x32xf32>
    %1 = arith.truncf %0 : vector<8x32xf32> to vector<8x32xbf16>
    %c0_1 = arith.constant 0 : index
    %c0_2 = arith.constant 0 : index
    %2 = vector.load %arg2[%c0_1, %c0_2] : memref<32x256xbf16, #tpu.memory_space<vmem>>, vector<32x256xbf16>
    %cst = arith.constant dense<0.000000e+00> : vector<8x256xf32>
    %3 = tpu.matmul %1, %2, %cst {dimension_numbers = #tpu.dot_dimension_numbers<[1], [0], [0], [1], [0, 0, 1, 1], [], []>} : vector<8x32xbf16>, vector<32x256xbf16>, vector<8x256xf32> -> vector<8x256xf32>
    %c0_3 = arith.constant 0 : index
    %c0_4 = arith.constant 0 : index
    %4 = vector.load %arg3[%c0_3, %c0_4] : memref<1x256xf32, #tpu.memory_space<vmem>>, vector<1x256xf32>
    %5 = vector.broadcast %4 : vector<1x256xf32> to vector<8x256xf32>
    %6 = arith.addf %3, %5 : vector<8x256xf32>
    %7 = vector.extract_strided_slice %6 {offsets = [0, 0], sizes = [8, 128], strides = [1, 1]} : vector<8x256xf32> to vector<8x128xf32>
    %cst_5 = arith.constant -8.000000e+01 : f32
    %cst_6 = arith.constant 8.000000e+01 : f32
    %8 = vector.broadcast %cst_5 : f32 to vector<8x128xf32>
    %9 = arith.maximumf %8, %7 : vector<8x128xf32>
    %10 = vector.broadcast %cst_6 : f32 to vector<8x128xf32>
    %11 = arith.minimumf %10, %9 : vector<8x128xf32>
    %cst_7 = arith.constant 0.000000e+00 : f32
    %12 = vector.broadcast %cst_7 : f32 to vector<8x128xf32>
    %13 = arith.subf %12, %11 : vector<8x128xf32>
    %14 = math.exp %13 : vector<8x128xf32>
    %cst_8 = arith.constant 1.000000e+00 : f32
    %15 = vector.broadcast %cst_8 : f32 to vector<8x128xf32>
    %16 = arith.addf %15, %14 : vector<8x128xf32>
    %17 = tpu.reciprocal %16 {approx = true} : vector<8x128xf32> -> vector<8x128xf32>
    %18 = vector.extract_strided_slice %6 {offsets = [0, 128], sizes = [8, 128], strides = [1, 1]} : vector<8x256xf32> to vector<8x128xf32>
    %cst_9 = arith.constant -8.000000e+01 : f32
    %cst_10 = arith.constant 8.000000e+01 : f32
    %19 = vector.broadcast %cst_9 : f32 to vector<8x128xf32>
    %20 = arith.maximumf %19, %18 : vector<8x128xf32>
    %21 = vector.broadcast %cst_10 : f32 to vector<8x128xf32>
    %22 = arith.minimumf %21, %20 : vector<8x128xf32>
    %cst_11 = arith.constant 0.000000e+00 : f32
    %23 = vector.broadcast %cst_11 : f32 to vector<8x128xf32>
    %24 = arith.subf %23, %22 : vector<8x128xf32>
    %25 = math.exp %24 : vector<8x128xf32>
    %cst_12 = arith.constant 1.000000e+00 : f32
    %26 = vector.broadcast %cst_12 : f32 to vector<8x128xf32>
    %27 = arith.addf %26, %25 : vector<8x128xf32>
    %28 = tpu.reciprocal %27 {approx = true} : vector<8x128xf32> -> vector<8x128xf32>
    %29 = arith.mulf %17, %28 : vector<8x128xf32>
    %c0_13 = arith.constant 0 : index
    %c0_14 = arith.constant 0 : index
    %30 = vector.load %arg4[%c0_13, %c0_14] : memref<8x128xf32, #tpu.memory_space<vmem>>, vector<8x128xf32>
    tpu.vector_store %arg4[%c0_13, %c0_14], %29 {strides = array<i32>} : memref<8x128xf32, #tpu.memory_space<vmem>>, vector<8x128xf32>,
    return
  }
  func.func @transform_0(%arg0: i32) -> (i32, i32) {
    %c0_i32 = arith.constant 0 : i32
    %c0_i32_0 = arith.constant 0 : i32
    return %arg0, %c0_i32 : i32, i32
  }
  func.func @transform_1(%arg0: i32) -> (i32, i32) {
    %c0_i32 = arith.constant 0 : i32
    %c0_i32_0 = arith.constant 0 : i32
    %c0_i32_1 = arith.constant 0 : i32
    return %c0_i32, %c0_i32_0 : i32, i32
  }
  func.func @transform_2(%arg0: i32) -> (i32, i32) {
    %c0_i32 = arith.constant 0 : i32
    %c0_i32_0 = arith.constant 0 : i32
    %c0_i32_1 = arith.constant 0 : i32
    return %c0_i32, %c0_i32_0 : i32, i32
  }
  func.func @transform_3(%arg0: i32) -> (i32, i32) {
    %c0_i32 = arith.constant 0 : i32
    %c0_i32_0 = arith.constant 0 : i32
    return %arg0, %c0_i32 : i32, i32
  }
}

module attributes {stable_mosaic.version = 11 : i64} {
  func.func @_fused_kernel(%arg0: i32, %arg1: memref<8x32xf32, #tpu.memory_space<vmem>>, %arg2: memref<32x256xbf16, #tpu.memory_space<vmem>>, %arg3: memref<1x256xf32, #tpu.memory_space<vmem>>, %arg4: memref<8x128xf32, #tpu.memory_space<vmem>>) attributes {dimension_semantics = [#tpu.dimension_semantics<parallel>], iteration_bounds = array<i64: 1>, scalar_prefetch = 0 : i64, scratch_operands = 0 : i64, tpu.core_type = #tpu.core_type<tc>, window_params = [{transform_indices = @transform_0, window_bounds = array<i64: 8, 32>}, {pipeline_mode = #tpu.pipeline_mode<synchronous>, transform_indices = @transform_1, window_bounds = array<i64: 32, 256>}, {pipeline_mode = #tpu.pipeline_mode<synchronous>, transform_indices = @transform_2, window_bounds = array<i64: 1, 256>}, {transform_indices = @transform_3, window_bounds = array<i64: 8, 128>}]} {
    %c0 = arith.constant 0 : index
    %c0_0 = arith.constant 0 : index
    %0 = vector.load %arg1[%c0, %c0_0] : memref<8x32xf32, #tpu.memory_space<vmem>>, vector<8x32xf32>
    %1 = arith.truncf %0 : vector<8x32xf32> to vector<8x32xbf16>
    %c0_1 = arith.constant 0 : index
    %c0_2 = arith.constant 0 : index
    %2 = vector.load %arg2[%c0_1, %c0_2] : memref<32x256xbf16, #tpu.memory_space<vmem>>, vector<32x256xbf16>
    %cst = arith.constant dense<0.000000e+00> : vector<8x256xf32>
    %3 = tpu.matmul %1, %2, %cst {dimension_numbers = #tpu.dot_dimension_numbers<[1], [0], [0], [1], [0, 0, 1, 1], [], []>} : vector<8x32xbf16>, vector<32x256xbf16>, vector<8x256xf32> -> vector<8x256xf32>
    %c0_3 = arith.constant 0 : index
    %c0_4 = arith.constant 0 : index
    %4 = vector.load %arg3[%c0_3, %c0_4] : memref<1x256xf32, #tpu.memory_space<vmem>>, vector<1x256xf32>
    %5 = vector.broadcast %4 : vector<1x256xf32> to vector<8x256xf32>
    %6 = arith.addf %3, %5 : vector<8x256xf32>
    %7 = vector.extract_strided_slice %6 {offsets = [0, 0], sizes = [8, 128], strides = [1, 1]} : vector<8x256xf32> to vector<8x128xf32>
    %cst_5 = arith.constant -8.000000e+01 : f32
    %cst_6 = arith.constant 8.000000e+01 : f32
    %8 = vector.broadcast %cst_5 : f32 to vector<8x128xf32>
    %9 = arith.maximumf %8, %7 : vector<8x128xf32>
    %10 = vector.broadcast %cst_6 : f32 to vector<8x128xf32>
    %11 = arith.minimumf %10, %9 : vector<8x128xf32>
    %cst_7 = arith.constant 0.000000e+00 : f32
    %12 = vector.broadcast %cst_7 : f32 to vector<8x128xf32>
    %13 = arith.subf %12, %11 : vector<8x128xf32>
    %14 = math.exp %13 : vector<8x128xf32>
    %cst_8 = arith.constant 1.000000e+00 : f32
    %15 = vector.broadcast %cst_8 : f32 to vector<8x128xf32>
    %16 = arith.addf %15, %14 : vector<8x128xf32>
    %17 = tpu.reciprocal %16 {approx = true} : vector<8x128xf32> -> vector<8x128xf32>
    %18 = vector.extract_strided_slice %6 {offsets = [0, 128], sizes = [8, 128], strides = [1, 1]} : vector<8x256xf32> to vector<8x128xf32>
    %cst_9 = arith.constant -8.000000e+01 : f32
    %cst_10 = arith.constant 8.000000e+01 : f32
    %19 = vector.broadcast %cst_9 : f32 to vector<8x128xf32>
    %20 = arith.maximumf %19, %18 : vector<8x128xf32>
    %21 = vector.broadcast %cst_10 : f32 to vector<8x128xf32>
    %22 = arith.minimumf %21, %20 : vector<8x128xf32>
    %cst_11 = arith.constant 0.000000e+00 : f32
    %23 = vector.broadcast %cst_11 : f32 to vector<8x128xf32>
    %24 = arith.subf %23, %22 : vector<8x128xf32>
    %25 = math.exp %24 : vector<8x128xf32>
    %cst_12 = arith.constant 1.000000e+00 : f32
    %26 = vector.broadcast %cst_12 : f32 to vector<8x128xf32>
    %27 = arith.addf %26, %25 : vector<8x128xf32>
    %28 = tpu.reciprocal %27 {approx = true} : vector<8x128xf32> -> vector<8x128xf32>
    %29 = arith.mulf %17, %28 : vector<8x128xf32>
    %c0_13 = arith.constant 0 : index
    %c0_14 = arith.constant 0 : index
    %30 = vector.load %arg4[%c0_13, %c0_14] : memref<8x128xf32, #tpu.memory_space<vmem>>, vector<8x128xf32>
    tpu.vector_store %arg4[%c0_13, %c0_14], %29 {strides = array<i32>} : memref<8x128xf32, #tpu.memory_space<vmem>>, vector<8x128xf32>,
    return
  }
  func.func @transform_0(%arg0: i32) -> (i32, i32) {
    %c0_i32 = arith.constant 0 : i32
    %c0_i32_0 = arith.constant 0 : i32
    return %arg0, %c0_i32 : i32, i32
  }
  func.func @transform_1(%arg0: i32) -> (i32, i32) {
    %c0_i32 = arith.constant 0 : i32
    %c0_i32_0 = arith.constant 0 : i32
    %c0_i32_1 = arith.constant 0 : i32
    return %c0_i32, %c0_i32_0 : i32, i32
  }
  func.func @transform_2(%arg0: i32) -> (i32, i32) {
    %c0_i32 = arith.constant 0 : i32
    %c0_i32_0 = arith.constant 0 : i32
    %c0_i32_1 = arith.constant 0 : i32
    return %c0_i32, %c0_i32_0 : i32, i32
  }
  func.func @transform_3(%arg0: i32) -> (i32, i32) {
    %c0_i32 = arith.constant 0 : i32
    %c0_i32_0 = arith.constant 0 : i32
    return %arg0, %c0_i32 : i32, i32
  }
}

</mosaic_0001>

<bundles_post_ra>
// kernel: _gated_head_impl.1
= control target key start
LH: loop header
LB: loop body
LE: loop exit
PB: predicated region body
PF: predicated region fallthrough
CT: control target
= control target key end

     0   :  { %8 = vsyncpa [#allocation3], 0  ;;  %s333_s0 = inlined_call_operand.hbm [shape: f32[8,32], index: 0, kind: input, shape index: {}]   ;;  %s334_s1 = inlined_call_operand.hbm [shape: bf16[32,256], index: 1, kind: input, shape index: {}]   ;;  %s335_s2 = inlined_call_operand.hbm [shape: f32[1,256], index: 2, kind: input, shape index: {}]   ;;  %s336_s3 = inlined_call_operand.hbm [shape: f32[8,128], index: 3, kind: output, shape index: {}]  }
   0x1   :  { %9 = vsyncpa [#allocation6], 0  ;;  %s26_s14 = sshll.u32 %s334_s1, 4  ;;  %s27_s14 = int_to_ptr.hbm [resolvable:$true] %s26_s14 }
   0x2   :  { %10 = vsyncpa [#allocation4], 0  ;;  %s295_s15 = smov [#allocation5]   ;;  %s16_s19 = sshll.u32 %s333_s0, 4  ;;  %s17_s19 = int_to_ptr.hbm [resolvable:$true] %s16_s19 }
   0x3   :  { %s28_s16 = sshll.u32 %s295_s15, 4  ;;  %s296_s20 = smov 128   ;;  %s29_s16 = int_to_ptr.vmem [resolvable:$true] %s28_s16 }
   0x4   :  { %s297_s21 = smov 8   ;;  %s298_s22 = smov [#allocation2]  }
   0x5   :  { %34 = dma.hbm_to_vmem [thread:$0]  %s27_s14, 512, %s29_s16, [#allocation6], %s296_s20, %s296_s20, %s297_s21  }
   0x6   :  { %s18_s23 = sshll.u32 %s298_s22, 4  ;;  %s40_s26 = sshll.u32 %s335_s2, 4  ;;  %s19_s23 = int_to_ptr.vmem [resolvable:$true] %s18_s23  ;;  %s41_s26 = int_to_ptr.hbm [resolvable:$true] %s40_s26 }
   0x7   :  { %21 = dma.hbm_to_vmem [thread:$0]  %s17_s19, 128, %s19_s23, [#allocation3]  }
   0x8   :  { %s299_s1 = smov [#allocation7]  }
   0x9   :  { %s42_s27 = sshll.u32 %s299_s1, 4  ;;  %s43_s27 = int_to_ptr.vmem [resolvable:$true] %s42_s27 }
   0xa   :  { %45 = dma.hbm_to_vmem [thread:$0]  %s41_s26, 32, %s43_s27, [#allocation6]  }
   0xb   :  { %289 = dma.done.wait [#allocation3], 128  }
   0xc   :  { %290 = vsyncadd [#allocation3], 4294967168 }
   0xd   :  { %291 = dma.done.wait [#allocation6], 544  }
   0xe   :  { %292 = vsyncadd [#allocation6], 4294966752  ;;  %v165_v0 = vld [vmem:[#allocation5 + $0x10] sm:$0xf]  ;;  %v178_v1 = vld [vmem:[#allocation5 + $0x14] sm:$0xf0] }
   0xf   :  { %v177_v2 = vld [vmem:[#allocation5 + $0x14] sm:$0xf]  ;;  %v166_v3 = vor.u32 %v178_v1, %v165_v0  ;;  %v167_v4 = vld [vmem:[#allocation5 + $0x18] sm:$0xf0]  ;;  %v157_v5 = vld [vmem:[#allocation5] sm:$0xf] }
  0x10   :  { %v176_v6 = vld [vmem:[#allocation5 + $0x4] sm:$0xf0]  ;;  %v170_v7 = vor.u32 %v177_v2, %v167_v4  ;;  %v175_v8 = vld [vmem:[#allocation5 + $0x4] sm:$0xf]  ;;  %v159_v9 = vld [vmem:[#allocation5 + $0x8] sm:$0xf0] }
  0x11   :  { %101 = vmatpush.bf16.msra.mxu0 %v166_v3  ;;  %v158_v10 = vor.u32 %v176_v6, %v157_v5  ;;  %v59_v11 = vld [vmem:[#allocation2] sm:$0xff]  ;;  %v162_v12 = vor.u32 %v175_v8, %v159_v9  ;;  %vm91_vm0 = vcmask 261120   ;;  %v65_v14 = vld [vmem:[#allocation7] sm:$0x3]  ;;  %s300_s0 = smov [#allocation8]   ;;  %s144_s30 = sshll.u32 %s336_s3, 4  ;;  %s145_s30 = int_to_ptr.hbm [resolvable:$true] %s144_s30 }
  0x12   :  { %114 = vmatpush.bf16.msra.mxu1 %v170_v7  ;;  %v60_v13 = vpack.c.bf16 %v59_v11, %v59_v11  ;;  %v67_v15 = vperm.slane %v65_v14, 0  ;;  %v68_v16 = vperm.slane %v65_v14, 1  ;;  %s142_s2 = sshll.u32 %s300_s0, 4  ;;  %s143_s2 = int_to_ptr.vmem [resolvable:$true] %s142_s2 }
  0x15   :  { %102 = vmatpush.bf16.msra.mxu0 %v158_v10 }
  0x16   :  { %115 = vmatpush.bf16.msra.mxu1 %v162_v12 }
  0x18   :  { %171 = vmatmul.msk.bf16.vlgmr.msra.gmra.mxu0 %vm91_vm0, %v60_v13 }
  0x19   :  { %172 = vmatmul.msk.bf16.vlgmr.msra.gmra.mxu1 %vm91_vm0, %v60_v13 }
  0x95   :  { %v104_v17 = vpop.f32.mrf.mxu0 }
  0x96   :  { %v105_v18 = vadd.f32 %v104_v17, %v67_v15  ;;  %v117_v19 = vpop.f32.mrf.mxu1 }
  0x97   :  { %v118_v20 = vadd.f32 %v117_v19, %v68_v16 }
  0x98   :  { %v173_v21 = vclamps-f32 %v105_v18, 80.0 }
  0x99   :  { %v174_v22 = vclamps-f32 %v118_v20, 80.0 }
  0x9a   :  { %v123_v23 = vsub.f32 0.0, %v173_v21 }
  0x9b   :  { %v130_v24 = vsub.f32 0.0, %v174_v22 }
  0x9c   :  { %v124_v25 = vmul.f32 1.442695, %v123_v23 }
  0x9d   :  { %v131_v26 = vmul.f32 1.442695, %v130_v24  ;;  %v106_v27 = vpop.f32.mrf.mxu0 }
  0x9e   :  { %185 = vpow2.f32 %v124_v25  ;;  %v119_v28 = vpop.f32.mrf.mxu1 }
  0x9f   :  { %187 = vpow2.f32 %v131_v26 }
  0xa4   :  { %v186_v29 = vpop.eup %185 }
  0xa5   :  { %v188_v30 = vpop.eup %187  ;;  %v126_v31 = vadd.f32 1.0, %v186_v29 }
  0xa6   :  { %v133_v32 = vadd.f32 1.0, %v188_v30 }
  0xa7   :  { %189 = vrcp.f32 %v126_v31 }
  0xa8   :  { %191 = vrcp.f32 %v133_v32 }
  0xad   :  { %v190_v33 = vpop.eup %189 }
  0xae   :  { %v192_v34 = vpop.eup %191 }
  0xaf   :  { %v135_v35 = vmul.f32 %v192_v34, %v190_v33 }
  0xb1   :  { %136 = vst [vmem:[#allocation8] sm:$0xff] %v135_v35 }
  0xb2   :  { %147 = dma.vmem_to_hbm [thread:$0]  %s143_s2, 128, %s145_s30, [#allocation4]  }
  0xb3   :  { %293 = dma.done.wait [#allocation4], 128  }
  0xb4   :  { %294 = vsyncadd [#allocation4], 4294967168 }
  0xb5   :  { %152 = vsyncpa [#allocation3], 1 }
  0xb6   :  { %153 = vsyncpa [#allocation6], 1 }
  0xb7   :  { %154 = vsyncpa [#allocation4], 1 }

// kernel: _gated_head_impl.1
= control target key start
LH: loop header
LB: loop body
LE: loop exit
PB: predicated region body
PF: predicated region fallthrough
CT: control target
= control target key end

     0   :  { %8 = vsyncpa [#allocation3], 0  ;;  %s333_s0 = inlined_call_operand.hbm [shape: f32[8,32], index: 0, kind: input, shape index: {}]   ;;  %s334_s1 = inlined_call_operand.hbm [shape: bf16[32,256], index: 1, kind: input, shape index: {}]   ;;  %s335_s2 = inlined_call_operand.hbm [shape: f32[1,256], index: 2, kind: input, shape index: {}]   ;;  %s336_s3 = inlined_call_operand.hbm [shape: f32[8,128], index: 3, kind: output, shape index: {}]  }
   0x1   :  { %9 = vsyncpa [#allocation6], 0  ;;  %s26_s14 = sshll.u32 %s334_s1, 4  ;;  %s27_s14 = int_to_ptr.hbm [resolvable:$true] %s26_s14 }
   0x2   :  { %10 = vsyncpa [#allocation4], 0  ;;  %s295_s15 = smov [#allocation5]   ;;  %s16_s19 = sshll.u32 %s333_s0, 4  ;;  %s17_s19 = int_to_ptr.hbm [resolvable:$true] %s16_s19 }
   0x3   :  { %s28_s16 = sshll.u32 %s295_s15, 4  ;;  %s296_s20 = smov 128   ;;  %s29_s16 = int_to_ptr.vmem [resolvable:$true] %s28_s16 }
   0x4   :  { %s297_s21 = smov 8   ;;  %s298_s22 = smov [#allocation2]  }
   0x5   :  { %34 = dma.hbm_to_vmem [thread:$0]  %s27_s14, 512, %s29_s16, [#allocation6], %s296_s20, %s296_s20, %s297_s21  }
   0x6   :  { %s18_s23 = sshll.u32 %s298_s22, 4  ;;  %s40_s26 = sshll.u32 %s335_s2, 4  ;;  %s19_s23 = int_to_ptr.vmem [resolvable:$true] %s18_s23  ;;  %s41_s26 = int_to_ptr.hbm [resolvable:$true] %s40_s26 }
   0x7   :  { %21 = dma.hbm_to_vmem [thread:$0]  %s17_s19, 128, %s19_s23, [#allocation3]  }
   0x8   :  { %s299_s1 = smov [#allocation7]  }
   0x9   :  { %s42_s27 = sshll.u32 %s299_s1, 4  ;;  %s43_s27 = int_to_ptr.vmem [resolvable:$true] %s42_s27 }
   0xa   :  { %45 = dma.hbm_to_vmem [thread:$0]  %s41_s26, 32, %s43_s27, [#allocation6]  }
   0xb   :  { %289 = dma.done.wait [#allocation3], 128  }
   0xc   :  { %290 = vsyncadd [#allocation3], 4294967168 }
   0xd   :  { %291 = dma.done.wait [#allocation6], 544  }
   0xe   :  { %292 = vsyncadd [#allocation6], 4294966752  ;;  %v165_v0 = vld [vmem:[#allocation5 + $0x10] sm:$0xf]  ;;  %v178_v1 = vld [vmem:[#allocation5 + $0x14] sm:$0xf0] }
   0xf   :  { %v177_v2 = vld [vmem:[#allocation5 + $0x14] sm:$0xf]  ;;  %v166_v3 = vor.u32 %v178_v1, %v165_v0  ;;  %v167_v4 = vld [vmem:[#allocation5 + $0x18] sm:$0xf0]  ;;  %v157_v5 = vld [vmem:[#allocation5] sm:$0xf] }
  0x10   :  { %v176_v6 = vld [vmem:[#allocation5 + $0x4] sm:$0xf0]  ;;  %v170_v7 = vor.u32 %v177_v2, %v167_v4  ;;  %v175_v8 = vld [vmem:[#allocation5 + $0x4] sm:$0xf]  ;;  %v159_v9 = vld [vmem:[#allocation5 + $0x8] sm:$0xf0] }
  0x11   :  { %101 = vmatpush.bf16.msra.mxu0 %v166_v3  ;;  %v158_v10 = vor.u32 %v176_v6, %v157_v5  ;;  %v59_v11 = vld [vmem:[#allocation2] sm:$0xff]  ;;  %v162_v12 = vor.u32 %v175_v8, %v159_v9  ;;  %vm91_vm0 = vcmask 261120   ;;  %v65_v14 = vld [vmem:[#allocation7] sm:$0x3]  ;;  %s300_s0 = smov [#allocation8]   ;;  %s144_s30 = sshll.u32 %s336_s3, 4  ;;  %s145_s30 = int_to_ptr.hbm [resolvable:$true] %s144_s30 }
  0x12   :  { %114 = vmatpush.bf16.msra.mxu1 %v170_v7  ;;  %v60_v13 = vpack.c.bf16 %v59_v11, %v59_v11  ;;  %v67_v15 = vperm.slane %v65_v14, 0  ;;  %v68_v16 = vperm.slane %v65_v14, 1  ;;  %s142_s2 = sshll.u32 %s300_s0, 4  ;;  %s143_s2 = int_to_ptr.vmem [resolvable:$true] %s142_s2 }
  0x15   :  { %102 = vmatpush.bf16.msra.mxu0 %v158_v10 }
  0x16   :  { %115 = vmatpush.bf16.msra.mxu1 %v162_v12 }
  0x18   :  { %171 = vmatmul.msk.bf16.vlgmr.msra.gmra.mxu0 %vm91_vm0, %v60_v13 }
  0x19   :  { %172 = vmatmul.msk.bf16.vlgmr.msra.gmra.mxu1 %vm91_vm0, %v60_v13 }
  0x95   :  { %v104_v17 = vpop.f32.mrf.mxu0 }
  0x96   :  { %v105_v18 = vadd.f32 %v104_v17, %v67_v15  ;;  %v117_v19 = vpop.f32.mrf.mxu1 }
  0x97   :  { %v118_v20 = vadd.f32 %v117_v19, %v68_v16 }
  0x98   :  { %v173_v21 = vclamps-f32 %v105_v18, 80.0 }
  0x99   :  { %v174_v22 = vclamps-f32 %v118_v20, 80.0 }
  0x9a   :  { %v123_v23 = vsub.f32 0.0, %v173_v21 }
  0x9b   :  { %v130_v24 = vsub.f32 0.0, %v174_v22 }
  0x9c   :  { %v124_v25 = vmul.f32 1.442695, %v123_v23 }
  0x9d   :  { %v131_v26 = vmul.f32 1.442695, %v130_v24  ;;  %v106_v27 = vpop.f32.mrf.mxu0 }
  0x9e   :  { %185 = vpow2.f32 %v124_v25  ;;  %v119_v28 = vpop.f32.mrf.mxu1 }
  0x9f   :  { %187 = vpow2.f32 %v131_v26 }
  0xa4   :  { %v186_v29 = vpop.eup %185 }
  0xa5   :  { %v188_v30 = vpop.eup %187  ;;  %v126_v31 = vadd.f32 1.0, %v186_v29 }
  0xa6   :  { %v133_v32 = vadd.f32 1.0, %v188_v30 }
  0xa7   :  { %189 = vrcp.f32 %v126_v31 }
  0xa8   :  { %191 = vrcp.f32 %v133_v32 }
  0xad   :  { %v190_v33 = vpop.eup %189 }
  0xae   :  { %v192_v34 = vpop.eup %191 }
  0xaf   :  { %v135_v35 = vmul.f32 %v192_v34, %v190_v33 }
  0xb1   :  { %136 = vst [vmem:[#allocation8] sm:$0xff] %v135_v35 }
  0xb2   :  { %147 = dma.vmem_to_hbm [thread:$0]  %s143_s2, 128, %s145_s30, [#allocation4]  }
  0xb3   :  { %293 = dma.done.wait [#allocation4], 128  }
  0xb4   :  { %294 = vsyncadd [#allocation4], 4294967168 }
  0xb5   :  { %152 = vsyncpa [#allocation3], 1 }
  0xb6   :  { %153 = vsyncpa [#allocation6], 1 }
  0xb7   :  { %154 = vsyncpa [#allocation4], 1 }

</bundles_post_ra>
